<compile_context>
chip_gen: v7x
topology: tpu7x:2x2x1
jax: 0.10.0
libtpu: 0.0.40
codegen_flags: <defaults>
</compile_context>

<pallas_src>
import math
import functools

import jax
import jax.numpy as jnp
from jax import lax
from jax.experimental import pallas as pl
from jax.experimental.pallas import tpu as pltpu


NEG_INF = -1000000000.0   # same constant torch masked_fill uses in the reference module
RUNNING_MAX_INIT = -1e30  # finite init for the online-softmax running max (avoids inf-inf)


def _vmem_limit_bytes():
    """Generation-aware VMEM limit: ~75% of physical (96 MiB on v5e/v6e, 48 MiB on v7x)."""
    cap = 64 * 1024 * 1024
    try:
        cap = int(pltpu.get_tpu_info().vmem_capacity_bytes)
    except Exception:  # info query unavailable -> assume the smallest (v7x) physical VMEM
        pass
    return min((cap * 3) // 4, 110 * 1024 * 1024)


_BUFFERED_OK = None


def _buffered_weights_supported():
    """Probe (once) whether pipeline_mode=pl.Buffered(1) lowers on this jax/libtpu.

    The broad except is confined to this trivial probe kernel, so genuine bugs in
    the real kernels are never silently swallowed (review feedback)."""
    global _BUFFERED_OK
    if _BUFFERED_OK is None:
        def probe(w_ref, o_ref):
            o_ref[...] = w_ref[...] + 1.0
        try:
            out = pl.pallas_call(
                probe, grid=(2,),
                in_specs=[pl.BlockSpec((8, 128), lambda i: (0, 0),
                                       pipeline_mode=pl.Buffered(1))],
                out_specs=pl.BlockSpec((8, 128), lambda i: (0, 0)),
                out_shape=jax.ShapeDtypeStruct((8, 128), jnp.float32),
            )(jnp.zeros((8, 128), jnp.float32))
            jax.block_until_ready(out)
            _BUFFERED_OK = True
        except Exception:
            _BUFFERED_OK = False
    return _BUFFERED_OK


def _layer_norm_f32(v, gamma, beta, eps=1e-5):
    mean = jnp.mean(v, axis=-1, keepdims=True)
    var = jnp.mean(jnp.square(v - mean), axis=-1, keepdims=True)
    return (v - mean) * lax.rsqrt(var + eps) * gamma + beta


# ---------------------------------------------------------------------------------
# Kernel 1: pre-norm (LN1) + fused QKV projection. One (TS, D) x (D, 3D) bf16 GEMM.
# q is pre-scaled by 1/sqrt(d_k); q/k/v are stored head-major (B, H, S, d_k) so the
# attention kernel never pays per-kv-step sub-128-lane head slicing.
# ---------------------------------------------------------------------------------
def _qkv_kernel(x_ref, g_ref, b_ref, wqkv_ref, q_ref, k_ref, v_ref, *,
                scale, n_heads, d_k):
    d_model = n_heads * d_k
    x = x_ref[0].astype(jnp.float32)                                  # (TQ, D)
    x2 = _layer_norm_f32(x, g_ref[...], b_ref[...]).astype(jnp.bfloat16)
    qkv = jnp.dot(x2, wqkv_ref[...], preferred_element_type=jnp.float32)  # (TQ, 3D)
    for h in range(n_heads):          # head split paid once per q tile (amortized)
        q_ref[0, h] = (qkv[:, h * d_k:(h + 1) * d_k] * scale).astype(q_ref.dtype)
        k_ref[0, h] = qkv[:, d_model + h * d_k:
                          d_model + (h + 1) * d_k].astype(k_ref.dtype)
        v_ref[0, h] = qkv[:, 2 * d_model + h * d_k:
                          2 * d_model + (h + 1) * d_k].astype(v_ref.dtype)


# ---------------------------------------------------------------------------------
# Kernel 2: flash-style self-attention + output projection + residual.
# grid = (B, n_q, n_kv); kv axis innermost ("arbitrary"). Heads are leading-axis
# ref indices; the per-head loop is a fori_loop (bounded vreg live ranges).
# ---------------------------------------------------------------------------------
def _attn_kernel(x_ref, q_ref, k_ref, v_ref, mask_ref, wfc_ref, bfc_ref,
                 out_ref, m_ref, l_ref, acc_ref, *, n_heads):
    ki = pl.program_id(2)

    @pl.when(ki == 0)
    def _init():
        m_ref[...] = jnp.full_like(m_ref, RUNNING_MAX_INIT)
        l_ref[...] = jnp.zeros_like(l_ref)
        acc_ref[...] = jnp.zeros_like(acc_ref)

    # additive mask bias, built ONCE per (q, kv) tile and shared by every head
    bias = jnp.where(mask_ref[0] == 0, NEG_INF, 0.0).astype(jnp.float32)

    def head_body(h, carry):
        q = q_ref[h]                                # (TQ, d_k) bf16, pre-scaled
        k = k_ref[h]                                # (TKV, d_k) bf16
        v = v_ref[h]                                # (TKV, d_k) bf16
        s = lax.dot_general(q, k, (((1,), (1,)), ((), ())),
                            preferred_element_type=jnp.float32)       # (TQ, TKV)
        s = s + bias
        m_prev = m_ref[h]                                              # (TQ, 1)
        m_new = jnp.maximum(m_prev, jnp.max(s, axis=-1, keepdims=True))
        alpha = jnp.exp(m_prev - m_new)
        p = jnp.exp(s - m_new)
        l_ref[h] = alpha * l_ref[h] + jnp.sum(p, axis=-1, keepdims=True)
        acc_ref[h] = alpha * acc_ref[h] + jnp.dot(
            p.astype(jnp.bfloat16), v, preferred_element_type=jnp.float32)
        m_ref[h] = m_new
        return carry

    lax.fori_loop(0, n_heads, head_body, 0)

    @pl.when(ki == pl.num_programs(2) - 1)
    def _finalize():
        tq, d_model = out_ref.shape[1], out_ref.shape[2]

        # out projection accumulated head by head against the (H, d_k, D)-reshaped FC
        # weight -> same result as torch's transpose/concat/FC, without an in-kernel
        # head concat or transpose.
        def proj_body(h, attn):
            o_h = acc_ref[h] * pl.reciprocal(l_ref[h], approx=True)    # (TQ, d_k)
            return attn + jnp.dot(o_h.astype(jnp.bfloat16), wfc_ref[h],
                                  preferred_element_type=jnp.float32)

        attn = lax.fori_loop(0, n_heads, proj_body,
                             jnp.zeros((tq, d_model), jnp.float32))
        out_ref[0] = (x_ref[0].astype(jnp.float32) + attn
                      + bfc_ref[...]).astype(out_ref.dtype)


# ---------------------------------------------------------------------------------
# Kernel 3a: LN2 + GELU FFN + residual with VMEM-RESIDENT weights.
# grid = (B, n_q); w1/w2 are grid-invariant const specs (DMA'd once per kernel) and
# d_ff is chunked INSIDE the kernel against a (TQ, D) f32 VMEM accumulator.
# ---------------------------------------------------------------------------------
def _ffn_resident_kernel(y_ref, g_ref, b_ref, w1_ref, b1_ref, w2_ref, b2_ref,
                         out_ref, acc_ref, *, tf, n_chunks):
    y = y_ref[0].astype(jnp.float32)
    x2 = _layer_norm_f32(y, g_ref[...], b_ref[...]).astype(jnp.bfloat16)
    acc_ref[...] = jnp.zeros_like(acc_ref)
    for c in range(n_chunks):                       # static chunk loop over resident weights
        sl = slice(c * tf, (c + 1) * tf)
        h = jnp.dot(x2, w1_ref[:, sl],
                    preferred_element_type=jnp.float32) + b1_ref[:, sl]
        h = jax.nn.gelu(h, approximate=False)       # exact GELU == torch nn.GELU()
        acc_ref[...] += jnp.dot(h.astype(jnp.bfloat16), w2_ref[sl, :],
                                preferred_element_type=jnp.float32)
    out_ref[0] = (y + acc_ref[...] + b2_ref[...]).astype(out_ref.dtype)


# ---------------------------------------------------------------------------------
# Kernel 3b (fallback when weights don't fit VMEM): LN2 + GELU FFN + residual,
# d_ff streamed on the grid. grid = (B, n_q_ffn, n_ff); d_ff axis innermost.
# ---------------------------------------------------------------------------------
def _ffn_chunked_kernel(y_ref, g_ref, b_ref, w1_ref, b1_ref, w2_ref, b2_ref,
                        out_ref, x2_ref, acc_ref):
    fi = pl.program_id(2)

    @pl.when(fi == 0)
    def _init():
        y = y_ref[0].astype(jnp.float32)
        x2_ref[...] = _layer_norm_f32(y, g_ref[...], b_ref[...]).astype(jnp.bfloat16)
        acc_ref[...] = jnp.zeros_like(acc_ref)

    h = jnp.dot(x2_ref[...], w1_ref[...],
                preferred_element_type=jnp.float32) + b1_ref[...]
    h = jax.nn.gelu(h, approximate=False)
    acc_ref[...] += jnp.dot(h.astype(jnp.bfloat16), w2_ref[...],
                            preferred_element_type=jnp.float32)

    @pl.when(fi == pl.num_programs(2) - 1)
    def _finalize():
        out = y_ref[0].astype(jnp.float32) + acc_ref[...] + b2_ref[...]
        out_ref[0] = out.astype(out_ref.dtype)


# ---------------------------------------------------------------------------------
# Wrapper
# ---------------------------------------------------------------------------------
def _const_spec(shape, single_buffer):
    """Full-array, grid-invariant operand (weights / LN params / biases)."""
    index_map = lambda *_: (0,) * len(shape)
    if single_buffer:
        # constant index_map => the default double buffer is pure VMEM waste
        return pl.BlockSpec(shape, index_map, pipeline_mode=pl.Buffered(1))
    return pl.BlockSpec(shape, index_map)


def encoder_layer(x, mask, params, *, n_heads, block_q=512, block_kv=1024,
                  block_ff=512, block_q_ffn=None):
    B, S, D = x.shape
    d_ff = params["w1"].shape[1]
    assert D % n_heads == 0
    d_k = D // n_heads

    vmem_limit = _vmem_limit_bytes()
    use_buf1 = _buffered_weights_supported()
    wbuf = 1 if use_buf1 else 2
    cs = functools.partial(_const_spec, single_buffer=use_buf1)

    # ---- tile sizes (generation-aware via the VMEM budget) ----
    tq = min(block_q, S)
    assert S % tq == 0
    # K/V residency: take the whole sequence per kv tile when it fits comfortably
    kv_bytes = 2 * 2 * S * D * 2                    # K + V blocks, bf16, double buffered
    tkv = S if kv_bytes <= vmem_limit // 4 else min(block_kv, S)
    assert S % tkv == 0
    n_q, n_kv = S // tq, S // tkv

    tf = min(block_ff, d_ff)
    assert d_ff % tf == 0

    bf16 = jnp.bfloat16
    scale = 1.0 / math.sqrt(d_k)
    wqkv = jnp.concatenate([params["wq"], params["wk"], params["wv"]],
                           axis=1).astype(bf16)                     # (D, 3D)
    wfc_heads = params["wfc"].reshape(n_heads, d_k, D).astype(bf16)  # (H, d_k, D)
    w1 = params["w1"].astype(bf16)
    w2 = params["w2"].astype(bf16)
    mask_i8 = mask.astype(jnp.int8)                 # 4x less mask DMA than int32

    cp2 = pltpu.CompilerParams(dimension_semantics=("parallel", "parallel"),
                               vmem_limit_bytes=vmem_limit)
    cp3 = pltpu.CompilerParams(
        dimension_semantics=("parallel", "parallel", "arbitrary"),
        vmem_limit_bytes=vmem_limit)

    # ---- 1) LN1 + fused QKV projection -> head-major bf16 q/k/v (B, H, S, d_k) ----
    q, k, v = pl.pallas_call(
        functools.partial(_qkv_kernel, scale=scale, n_heads=n_heads, d_k=d_k),
        grid=(B, n_q),
        in_specs=[
            pl.BlockSpec((1, tq, D), lambda b, i: (b, i, 0)),
            cs((1, D)), cs((1, D)),                               # ln1 gamma / beta
            cs((D, 3 * D)),                                       # fused wqkv (bf16)
        ],
        out_specs=[pl.BlockSpec((1, n_heads, tq, d_k),
                                lambda b, i: (b, 0, i, 0))] * 3,
        out_shape=[jax.ShapeDtypeStruct((B, n_heads, S, d_k), bf16)] * 3,
        compiler_params=cp2,
        cost_estimate=pl.CostEstimate(
            flops=6 * B * S * D * D,
            transcendentals=B * S,
            bytes_accessed=4 * B * S * D + 6 * D * D + 6 * B * S * D),
    )(x, params["ln1_g"], params["ln1_b"], wqkv)

    # ---- 2) flash attention + out projection + residual ----
    y1 = pl.pallas_call(
        functools.partial(_attn_kernel, n_heads=n_heads),
        grid=(B, n_q, n_kv),
        in_specs=[
            pl.BlockSpec((1, tq, D), lambda b, i, j: (b, i, 0)),                   # x (residual)
            pl.BlockSpec((None, n_heads, tq, d_k), lambda b, i, j: (b, 0, i, 0)),  # q
            pl.BlockSpec((None, n_heads, tkv, d_k), lambda b, i, j: (b, 0, j, 0)),  # k
            pl.BlockSpec((None, n_heads, tkv, d_k), lambda b, i, j: (b, 0, j, 0)),  # v
            pl.BlockSpec((1, tq, tkv), lambda b, i, j: (b, i, j)),                 # mask (int8)
            cs((n_heads, d_k, D)),                                                  # wfc (bf16)
            cs((1, D)),                                                             # bfc
        ],
        out_specs=pl.BlockSpec((1, tq, D), lambda b, i, j: (b, i, 0)),
        out_shape=jax.ShapeDtypeStruct((B, S, D), x.dtype),
        scratch_shapes=[
            pltpu.VMEM((n_heads, tq, 1), jnp.float32),     # running max m
            pltpu.VMEM((n_heads, tq, 1), jnp.float32),     # running sum l
            pltpu.VMEM((n_heads, tq, d_k), jnp.float32),   # output accumulator
        ],
        compiler_params=cp3,
        cost_estimate=pl.CostEstimate(
            flops=4 * B * S * S * D + 2 * B * S * D * D,
            transcendentals=B * n_heads * S * S,
            bytes_accessed=10 * B * S * D + B * S * S + 2 * D * D + 4 * B * S * D),
    )(x, q, k, v, mask_i8, wfc_heads, params["bfc"])

    # ---- 3) LN2 + GELU FFN + residual ----
    ffn_w_bytes = 2 * D * d_ff * 2 * wbuf
    if ffn_w_bytes <= vmem_limit // 2:
        # FFN weights fully VMEM-resident: DMA'd once per kernel instead of once per
        # (batch, q-tile); d_ff chunking happens inside the kernel body.
        out = pl.pallas_call(
            functools.partial(_ffn_resident_kernel, tf=tf, n_chunks=d_ff // tf),
            grid=(B, n_q),
            in_specs=[
                pl.BlockSpec((1, tq, D), lambda b, i: (b, i, 0)),   # y1 (residual)
                cs((1, D)), cs((1, D)),                             # ln2 gamma / beta
                cs((D, d_ff)), cs((1, d_ff)),                       # w1 (bf16), b1
                cs((d_ff, D)), cs((1, D)),                          # w2 (bf16), b2
            ],
            out_specs=pl.BlockSpec((1, tq, D), lambda b, i: (b, i, 0)),
            out_shape=jax.ShapeDtypeStruct((B, S, D), x.dtype),
            scratch_shapes=[pltpu.VMEM((tq, D), jnp.float32)],      # FFN accumulator
            compiler_params=cp2,
            cost_estimate=pl.CostEstimate(
                flops=4 * B * S * D * d_ff,
                transcendentals=B * S * d_ff,
                bytes_accessed=12 * B * S * D + 4 * D * d_ff),
        )(y1, params["ln2_g"], params["ln2_b"], w1, params["b1"], w2, params["b2"])
    else:
        # weights don't fit VMEM: stream d_ff chunks on the grid, with a larger,
        # decoupled q tile so each streamed weight chunk is reused over more rows.
        tqf = min(block_q_ffn or max(block_q, 512), S)
        if S % tqf != 0:
            tqf = tq
        out = pl.pallas_call(
            _ffn_chunked_kernel,
            grid=(B, S // tqf, d_ff // tf),
            in_specs=[
                pl.BlockSpec((1, tqf, D), lambda b, i, f: (b, i, 0)),   # y1 (residual)
                cs((1, D)), cs((1, D)),                                 # ln2 gamma / beta
                pl.BlockSpec((D, tf), lambda b, i, f: (0, f)),          # w1 chunk (bf16)
                pl.BlockSpec((1, tf), lambda b, i, f: (0, f)),          # b1 chunk
                pl.BlockSpec((tf, D), lambda b, i, f: (f, 0)),          # w2 chunk (bf16)
                cs((1, D)),                                             # b2
            ],
            out_specs=pl.BlockSpec((1, tqf, D), lambda b, i, f: (b, i, 0)),
            out_shape=jax.ShapeDtypeStruct((B, S, D), x.dtype),
            scratch_shapes=[pltpu.VMEM((tqf, D), jnp.bfloat16),   # cached LN2 output
                            pltpu.VMEM((tqf, D), jnp.float32)],   # FFN accumulator
            compiler_params=cp3,
            cost_estimate=pl.CostEstimate(
                flops=4 * B * S * D * d_ff,
                transcendentals=B * S * d_ff,
                bytes_accessed=12 * B * S * D + (B * (S // tqf)) * 4 * D * d_ff),
        )(y1, params["ln2_g"], params["ln2_b"], w1, params["b1"], w2, params["b2"])

    return out


# ---------------------------------------------------------------------------------
# Pure-JAX reference (f32) of the PyTorch forward pass, for a correctness check.
# ---------------------------------------------------------------------------------
def encoder_layer_reference(x, mask, params, *, n_heads):
    B, S, D = x.shape
    d_k = D // n_heads

    def ln(v, g, b, eps=1e-5):
        mu = jnp.mean(v, -1, keepdims=True)
        var = jnp.mean((v - mu) ** 2, -1, keepdims=True)
        return (v - mu) / jnp.sqrt(var + eps) * g + b

    x2 = ln(x, params["ln1_g"], params["ln1_b"])
    q = x2 @ params["wq"]
    k = x2 @ params["wk"]
    v = x2 @ params["wv"]
    to_heads = lambda t: t.reshape(B, S, n_heads, d_k).transpose(0, 2, 1, 3)
    qh, kh, vh = to_heads(q), to_heads(k), to_heads(v)
    scores = jnp.einsum("bhqd,bhkd->bhqk", qh, kh) / math.sqrt(d_k)
    scores = jnp.where(mask[:, None, :, :] == 0, NEG_INF, scores)
    p = jax.nn.softmax(scores, axis=-1)
    attn = jnp.einsum("bhqk,bhkd->bhqd", p, vh)
    concat = attn.transpose(0, 2, 1, 3).reshape(B, S, D)
    x = x + concat @ params["wfc"] + params["bfc"]
    x2 = ln(x, params["ln2_g"], params["ln2_b"])
    h = jax.nn.gelu(x2 @ params["w1"] + params["b1"], approximate=False)
    return x + h @ params["w2"] + params["b2"]


def init_params(key, d_model, d_ff):
    ks = jax.random.split(key, 8)
    s = 0.1
    return {
        # attention projections (no bias); weights stored (in, out): y = x @ W
        "wq": s * jax.random.normal(ks[0], (d_model, d_model), jnp.float32),
        "wk": s * jax.random.normal(ks[1], (d_model, d_model), jnp.float32),
        "wv": s * jax.random.normal(ks[2], (d_model, d_model), jnp.float32),
        "wfc": s * jax.random.normal(ks[3], (d_model, d_model), jnp.float32),
        "bfc": s * jax.random.normal(ks[4], (1, d_model), jnp.float32),
        # layer norms
        "ln1_g": jnp.ones((1, d_model), jnp.float32),
        "ln1_b": jnp.zeros((1, d_model), jnp.float32),
        "ln2_g": jnp.ones((1, d_model), jnp.float32),
        "ln2_b": jnp.zeros((1, d_model), jnp.float32),
        # feed-forward (d_model -> 4*d_model -> d_model)
        "w1": s * jax.random.normal(ks[5], (d_model, d_ff), jnp.float32),
        "b1": jnp.zeros((1, d_ff), jnp.float32),
        "w2": s * jax.random.normal(ks[6], (d_ff, d_model), jnp.float32),
        "b2": jnp.zeros((1, d_model), jnp.float32),
    }


if __name__ == "__main__":
    B, S, D, H = 2, 8, 32, 4          # batch, seq, d_model, nhead
    d_ff = 4 * D

    key = jax.random.PRNGKey(0)
    kx, kp = jax.random.split(key, 2)

    x = jax.random.normal(kx, (B, S, D), jnp.float32)
    # attention mask: 1 = keep, 0 = masked out (mask the last two key positions)
    mask = jnp.ones((B, S, S), jnp.int32)
    mask = mask.at[:, :, -2:].set(0)

    params = init_params(kp, D, d_ff)

    out = encoder_layer(x, mask, params, n_heads=H)
    out = jax.block_until_ready(out)
    assert out.shape == (B, S, D)
    assert bool(jnp.all(jnp.isfinite(out)))

    # correctness vs. pure-JAX f32 reference (loose tolerance: weights/qkv are bf16)
    ref = encoder_layer_reference(x, mask, params, n_heads=H)
    err = float(jnp.max(jnp.abs(out - ref)))
    assert err < 1e-1, f"max abs err {err}"

    print("KERNEL_OK")
</pallas_src>

<mosaic_0001>
module attributes {stable_mosaic.version = 11 : i64} {
  func.func @probe(%arg0: i32, %arg1: memref<8x128xf32, #tpu.memory_space<vmem>>, %arg2: memref<8x128xf32, #tpu.memory_space<vmem>>) attributes {dimension_semantics = [#tpu.dimension_semantics<arbitrary>], iteration_bounds = array<i64: 2>, scalar_prefetch = 0 : i64, scratch_operands = 0 : i64, tpu.core_type = #tpu.core_type<tc>, window_params = [{pipeline_mode = #tpu.pipeline_mode<synchronous>, transform_indices = @transform_0, window_bounds = array<i64: 8, 128>}, {pipeline_mode = #tpu.pipeline_mode<synchronous>, transform_indices = @transform_1, window_bounds = array<i64: 8, 128>}]} {
    %c0 = arith.constant 0 : index
    %c0_0 = arith.constant 0 : index
    %0 = vector.load %arg1[%c0, %c0_0] : memref<8x128xf32, #tpu.memory_space<vmem>>, vector<8x128xf32>
    %cst = arith.constant 1.000000e+00 : f32
    %1 = vector.broadcast %cst : f32 to vector<8x128xf32>
    %2 = arith.addf %0, %1 : vector<8x128xf32>
    %c0_1 = arith.constant 0 : index
    %c0_2 = arith.constant 0 : index
    %3 = vector.load %arg2[%c0_1, %c0_2] : memref<8x128xf32, #tpu.memory_space<vmem>>, vector<8x128xf32>
    tpu.vector_store %arg2[%c0_1, %c0_2], %2 {strides = array<i32>} : memref<8x128xf32, #tpu.memory_space<vmem>>, vector<8x128xf32>,
    return
  }
  func.func @transform_0(%arg0: i32) -> (i32, i32) {
    %c0_i32 = arith.constant 0 : i32
    %c0_i32_0 = arith.constant 0 : i32
    %c0_i32_1 = arith.constant 0 : i32
    return %c0_i32, %c0_i32_0 : i32, i32
  }
  func.func @transform_1(%arg0: i32) -> (i32, i32) {
    %c0_i32 = arith.constant 0 : i32
    %c0_i32_0 = arith.constant 0 : i32
    %c0_i32_1 = arith.constant 0 : i32
    return %c0_i32, %c0_i32_0 : i32, i32
  }
}

module attributes {stable_mosaic.version = 11 : i64} {
  func.func @_qkv_kernel(%arg0: i32, %arg1: i32, %arg2: memref<1x8x32xf32, #tpu.memory_space<vmem>>, %arg3: memref<1x32xf32, #tpu.memory_space<vmem>>, %arg4: memref<1x32xf32, #tpu.memory_space<vmem>>, %arg5: memref<32x96xbf16, #tpu.memory_space<vmem>>, %arg6: memref<1x4x8x8xbf16, #tpu.memory_space<vmem>>, %arg7: memref<1x4x8x8xbf16, #tpu.memory_space<vmem>>, %arg8: memref<1x4x8x8xbf16, #tpu.memory_space<vmem>>) attributes {dimension_semantics = [#tpu.dimension_semantics<parallel>, #tpu.dimension_semantics<parallel>], iteration_bounds = array<i64: 2, 1>, scalar_prefetch = 0 : i64, scratch_operands = 0 : i64, tpu.core_type = #tpu.core_type<tc>, window_params = [{transform_indices = @transform_0, window_bounds = array<i64: 1, 8, 32>}, {pipeline_mode = #tpu.pipeline_mode<synchronous>, transform_indices = @transform_1, window_bounds = array<i64: 1, 32>}, {pipeline_mode = #tpu.pipeline_mode<synchronous>, transform_indices = @transform_2, window_bounds = array<i64: 1, 32>}, {pipeline_mode = #tpu.pipeline_mode<synchronous>, transform_indices = @transform_3, window_bounds = array<i64: 32, 96>}, {transform_indices = @transform_4, window_bounds = array<i64: 1, 4, 8, 8>}, {transform_indices = @transform_5, window_bounds = array<i64: 1, 4, 8, 8>}, {transform_indices = @transform_6, window_bounds = array<i64: 1, 4, 8, 8>}]} {
    %c0 = arith.constant 0 : index
    %c0_0 = arith.constant 0 : index
    %c0_1 = arith.constant 0 : index
    %0 = vector.load %arg2[%c0, %c0_0, %c0_1] : memref<1x8x32xf32, #tpu.memory_space<vmem>>, vector<1x8x32xf32>
    %1 = vector.shape_cast %0 : vector<1x8x32xf32> to vector<8x32xf32>
    %c0_2 = arith.constant 0 : index
    %c0_3 = arith.constant 0 : index
    %2 = vector.load %arg3[%c0_2, %c0_3] : memref<1x32xf32, #tpu.memory_space<vmem>>, vector<1x32xf32>
    %c0_4 = arith.constant 0 : index
    %c0_5 = arith.constant 0 : index
    %3 = vector.load %arg4[%c0_4, %c0_5] : memref<1x32xf32, #tpu.memory_space<vmem>>, vector<1x32xf32>
    %cst = arith.constant dense<0.000000e+00> : vector<8xf32>
    %4 = vector.multi_reduction <add>, %1, %cst [1] : vector<8x32xf32> to vector<8xf32>
    %5 = vector.shape_cast %4 : vector<8xf32> to vector<8x1xf32>
    %cst_6 = arith.constant 3.200000e+01 : f32
    %6 = vector.broadcast %cst_6 : f32 to vector<8x1xf32>
    %7 = arith.divf %5, %6 : vector<8x1xf32>
    %8 = vector.broadcast %7 : vector<8x1xf32> to vector<8x32xf32>
    %9 = arith.subf %1, %8 : vector<8x32xf32>
    %10 = arith.mulf %9, %9 : vector<8x32xf32>
    %cst_7 = arith.constant dense<0.000000e+00> : vector<8xf32>
    %11 = vector.multi_reduction <add>, %10, %cst_7 [1] : vector<8x32xf32> to vector<8xf32>
    %12 = vector.shape_cast %11 : vector<8xf32> to vector<8x1xf32>
    %cst_8 = arith.constant 3.200000e+01 : f32
    %13 = vector.broadcast %cst_8 : f32 to vector<8x1xf32>
    %14 = arith.divf %12, %13 : vector<8x1xf32>
    %15 = vector.broadcast %7 : vector<8x1xf32> to vector<8x32xf32>
    %16 = arith.subf %1, %15 : vector<8x32xf32>
    %cst_9 = arith.constant 9.99999974E-6 : f32
    %17 = vector.broadcast %cst_9 : f32 to vector<8x1xf32>
    %18 = arith.addf %14, %17 : vector<8x1xf32>
    %19 = math.rsqrt %18 : vector<8x1xf32>
    %20 = vector.broadcast %19 : vector<8x1xf32> to vector<8x32xf32>
    %21 = arith.mulf %16, %20 : vector<8x32xf32>
    %22 = vector.broadcast %2 : vector<1x32xf32> to vector<8x32xf32>
    %23 = arith.mulf %21, %22 : vector<8x32xf32>
    %24 = vector.broadcast %3 : vector<1x32xf32> to vector<8x32xf32>
    %25 = arith.addf %23, %24 : vector<8x32xf32>
    %26 = arith.truncf %25 : vector<8x32xf32> to vector<8x32xbf16>
    %c0_10 = arith.constant 0 : index
    %c0_11 = arith.constant 0 : index
    %27 = vector.load %arg5[%c0_10, %c0_11] : memref<32x96xbf16, #tpu.memory_space<vmem>>, vector<32x96xbf16>
    %cst_12 = arith.constant dense<0.000000e+00> : vector<8x96xf32>
    %28 = tpu.matmul %26, %27, %cst_12 {dimension_numbers = #tpu.dot_dimension_numbers<[1], [0], [0], [1], [0, 0, 1, 1], [], []>} : vector<8x32xbf16>, vector<32x96xbf16>, vector<8x96xf32> -> vector<8x96xf32>
    %29 = vector.extract_strided_slice %28 {offsets = [0, 0], sizes = [8, 8], strides = [1, 1]} : vector<8x96xf32> to vector<8x8xf32>
    %cst_13 = arith.constant 0.353553385 : f32
    %30 = vector.broadcast %cst_13 : f32 to vector<8x8xf32>
    %31 = arith.mulf %29, %30 : vector<8x8xf32>
    %32 = arith.truncf %31 : vector<8x8xf32> to vector<8x8xbf16>
    %c0_14 = arith.constant 0 : index
    %c0_15 = arith.constant 0 : index
    %c0_16 = arith.constant 0 : index
    %c0_17 = arith.constant 0 : index
    %33 = vector.load %arg6[%c0_14, %c0_15, %c0_16, %c0_17] : memref<1x4x8x8xbf16, #tpu.memory_space<vmem>>, vector<1x1x8x8xbf16>
    %34 = vector.shape_cast %33 : vector<1x1x8x8xbf16> to vector<8x8xbf16>
    %35 = vector.shape_cast %32 : vector<8x8xbf16> to vector<1x1x8x8xbf16>
    tpu.vector_store %arg6[%c0_14, %c0_15, %c0_16, %c0_17], %35 {strides = array<i32>} : memref<1x4x8x8xbf16, #tpu.memory_space<vmem>>, vector<1x1x8x8xbf16>,
    %36 = vector.extract_strided_slice %28 {offsets = [0, 32], sizes = [8, 8], strides = [1, 1]} : vector<8x96xf32> to vector<8x8xf32>
    %37 = arith.truncf %36 : vector<8x8xf32> to vector<8x8xbf16>
    %c0_18 = arith.constant 0 : index
    %c0_19 = arith.constant 0 : index
    %c0_20 = arith.constant 0 : index
    %c0_21 = arith.constant 0 : index
    %38 = vector.load %arg7[%c0_18, %c0_19, %c0_20, %c0_21] : memref<1x4x8x8xbf16, #tpu.memory_space<vmem>>, vector<1x1x8x8xbf16>
    %39 = vector.shape_cast %38 : vector<1x1x8x8xbf16> to vector<8x8xbf16>
    %40 = vector.shape_cast %37 : vector<8x8xbf16> to vector<1x1x8x8xbf16>
    tpu.vector_store %arg7[%c0_18, %c0_19, %c0_20, %c0_21], %40 {strides = array<i32>} : memref<1x4x8x8xbf16, #tpu.memory_space<vmem>>, vector<1x1x8x8xbf16>,
    %41 = vector.extract_strided_slice %28 {offsets = [0, 64], sizes = [8, 8], strides = [1, 1]} : vector<8x96xf32> to vector<8x8xf32>
    %42 = arith.truncf %41 : vector<8x8xf32> to vector<8x8xbf16>
    %c0_22 = arith.constant 0 : index
    %c0_23 = arith.constant 0 : index
    %c0_24 = arith.constant 0 : index
    %c0_25 = arith.constant 0 : index
    %43 = vector.load %arg8[%c0_22, %c0_23, %c0_24, %c0_25] : memref<1x4x8x8xbf16, #tpu.memory_space<vmem>>, vector<1x1x8x8xbf16>
    %44 = vector.shape_cast %43 : vector<1x1x8x8xbf16> to vector<8x8xbf16>
    %45 = vector.shape_cast %42 : vector<8x8xbf16> to vector<1x1x8x8xbf16>
    tpu.vector_store %arg8[%c0_22, %c0_23, %c0_24, %c0_25], %45 {strides = array<i32>} : memref<1x4x8x8xbf16, #tpu.memory_space<vmem>>, vector<1x1x8x8xbf16>,
    %46 = vector.extract_strided_slice %28 {offsets = [0, 8], sizes = [8, 8], strides = [1, 1]} : vector<8x96xf32> to vector<8x8xf32>
    %cst_26 = arith.constant 0.353553385 : f32
    %47 = vector.broadcast %cst_26 : f32 to vector<8x8xf32>
    %48 = arith.mulf %46, %47 : vector<8x8xf32>
    %49 = arith.truncf %48 : vector<8x8xf32> to vector<8x8xbf16>
    %c0_27 = arith.constant 0 : index
    %c1 = arith.constant 1 : index
    %c0_28 = arith.constant 0 : index
    %c0_29 = arith.constant 0 : index
    %50 = vector.load %arg6[%c0_27, %c1, %c0_28, %c0_29] : memref<1x4x8x8xbf16, #tpu.memory_space<vmem>>, vector<1x1x8x8xbf16>
    %51 = vector.shape_cast %50 : vector<1x1x8x8xbf16> to vector<8x8xbf16>
    %52 = vector.shape_cast %49 : vector<8x8xbf16> to vector<1x1x8x8xbf16>
    tpu.vector_store %arg6[%c0_27, %c1, %c0_28, %c0_29], %52 {strides = array<i32>} : memref<1x4x8x8xbf16, #tpu.memory_space<vmem>>, vector<1x1x8x8xbf16>,
    %53 = vector.extract_strided_slice %28 {offsets = [0, 40], sizes = [8, 8], strides = [1, 1]} : vector<8x96xf32> to vector<8x8xf32>
    %54 = arith.truncf %53 : vector<8x8xf32> to vector<8x8xbf16>
    %c0_30 = arith.constant 0 : index
    %c1_31 = arith.constant 1 : index
    %c0_32 = arith.constant 0 : index
    %c0_33 = arith.constant 0 : index
    %55 = vector.load %arg7[%c0_30, %c1_31, %c0_32, %c0_33] : memref<1x4x8x8xbf16, #tpu.memory_space<vmem>>, vector<1x1x8x8xbf16>
    %56 = vector.shape_cast %55 : vector<1x1x8x8xbf16> to vector<8x8xbf16>
    %57 = vector.shape_cast %54 : vector<8x8xbf16> to vector<1x1x8x8xbf16>
    tpu.vector_store %arg7[%c0_30, %c1_31, %c0_32, %c0_33], %57 {strides = array<i32>} : memref<1x4x8x8xbf16, #tpu.memory_space<vmem>>, vector<1x1x8x8xbf16>,
    %58 = vector.extract_strided_slice %28 {offsets = [0, 72], sizes = [8, 8], strides = [1, 1]} : vector<8x96xf32> to vector<8x8xf32>
    %59 = arith.truncf %58 : vector<8x8xf32> to vector<8x8xbf16>
    %c0_34 = arith.constant 0 : index
    %c1_35 = arith.constant 1 : index
    %c0_36 = arith.constant 0 : index
    %c0_37 = arith.constant 0 : index
    %60 = vector.load %arg8[%c0_34, %c1_35, %c0_36, %c0_37] : memref<1x4x8x8xbf16, #tpu.memory_space<vmem>>, vector<1x1x8x8xbf16>
    %61 = vector.shape_cast %60 : vector<1x1x8x8xbf16> to vector<8x8xbf16>
    %62 = vector.shape_cast %59 : vector<8x8xbf16> to vector<1x1x8x8xbf16>
    tpu.vector_store %arg8[%c0_34, %c1_35, %c0_36, %c0_37], %62 {strides = array<i32>} : memref<1x4x8x8xbf16, #tpu.memory_space<vmem>>, vector<1x1x8x8xbf16>,
    %63 = vector.extract_strided_slice %28 {offsets = [0, 16], sizes = [8, 8], strides = [1, 1]} : vector<8x96xf32> to vector<8x8xf32>
    %cst_38 = arith.constant 0.353553385 : f32
    %64 = vector.broadcast %cst_38 : f32 to vector<8x8xf32>
    %65 = arith.mulf %63, %64 : vector<8x8xf32>
    %66 = arith.truncf %65 : vector<8x8xf32> to vector<8x8xbf16>
    %c0_39 = arith.constant 0 : index
    %c2 = arith.constant 2 : index
    %c0_40 = arith.constant 0 : index
    %c0_41 = arith.constant 0 : index
    %67 = vector.load %arg6[%c0_39, %c2, %c0_40, %c0_41] : memref<1x4x8x8xbf16, #tpu.memory_space<vmem>>, vector<1x1x8x8xbf16>
    %68 = vector.shape_cast %67 : vector<1x1x8x8xbf16> to vector<8x8xbf16>
    %69 = vector.shape_cast %66 : vector<8x8xbf16> to vector<1x1x8x8xbf16>
    tpu.vector_store %arg6[%c0_39, %c2, %c0_40, %c0_41], %69 {strides = array<i32>} : memref<1x4x8x8xbf16, #tpu.memory_space<vmem>>, vector<1x1x8x8xbf16>,
    %70 = vector.extract_strided_slice %28 {offsets = [0, 48], sizes = [8, 8], strides = [1, 1]} : vector<8x96xf32> to vector<8x8xf32>
    %71 = arith.truncf %70 : vector<8x8xf32> to vector<8x8xbf16>
    %c0_42 = arith.constant 0 : index
    %c2_43 = arith.constant 2 : index
    %c0_44 = arith.constant 0 : index
    %c0_45 = arith.constant 0 : index
    %72 = vector.load %arg7[%c0_42, %c2_43, %c0_44, %c0_45] : memref<1x4x8x8xbf16, #tpu.memory_space<vmem>>, vector<1x1x8x8xbf16>
    %73 = vector.shape_cast %72 : vector<1x1x8x8xbf16> to vector<8x8xbf16>
    %74 = vector.shape_cast %71 : vector<8x8xbf16> to vector<1x1x8x8xbf16>
    tpu.vector_store %arg7[%c0_42, %c2_43, %c0_44, %c0_45], %74 {strides = array<i32>} : memref<1x4x8x8xbf16, #tpu.memory_space<vmem>>, vector<1x1x8x8xbf16>,
    %75 = vector.extract_strided_slice %28 {offsets = [0, 80], sizes = [8, 8], strides = [1, 1]} : vector<8x96xf32> to vector<8x8xf32>
    %76 = arith.truncf %75 : vector<8x8xf32> to vector<8x8xbf16>
    %c0_46 = arith.constant 0 : index
    %c2_47 = arith.constant 2 : index
    %c0_48 = arith.constant 0 : index
    %c0_49 = arith.constant 0 : index
    %77 = vector.load %arg8[%c0_46, %c2_47, %c0_48, %c0_49] : memref<1x4x8x8xbf16, #tpu.memory_space<vmem>>, vector<1x1x8x8xbf16>
    %78 = vector.shape_cast %77 : vector<1x1x8x8xbf16> to vector<8x8xbf16>
    %79 = vector.shape_cast %76 : vector<8x8xbf16> to vector<1x1x8x8xbf16>
    tpu.vector_store %arg8[%c0_46, %c2_47, %c0_48, %c0_49], %79 {strides = array<i32>} : memref<1x4x8x8xbf16, #tpu.memory_space<vmem>>, vector<1x1x8x8xbf16>,
    %80 = vector.extract_strided_slice %28 {offsets = [0, 24], sizes = [8, 8], strides = [1, 1]} : vector<8x96xf32> to vector<8x8xf32>
    %cst_50 = arith.constant 0.353553385 : f32
    %81 = vector.broadcast %cst_50 : f32 to vector<8x8xf32>
    %82 = arith.mulf %80, %81 : vector<8x8xf32>
    %83 = arith.truncf %82 : vector<8x8xf32> to vector<8x8xbf16>
    %c0_51 = arith.constant 0 : index
    %c3 = arith.constant 3 : index
    %c0_52 = arith.constant 0 : index
    %c0_53 = arith.constant 0 : index
    %84 = vector.load %arg6[%c0_51, %c3, %c0_52, %c0_53] : memref<1x4x8x8xbf16, #tpu.memory_space<vmem>>, vector<1x1x8x8xbf16>
    %85 = vector.shape_cast %84 : vector<1x1x8x8xbf16> to vector<8x8xbf16>
    %86 = vector.shape_cast %83 : vector<8x8xbf16> to vector<1x1x8x8xbf16>
    tpu.vector_store %arg6[%c0_51, %c3, %c0_52, %c0_53], %86 {strides = array<i32>} : memref<1x4x8x8xbf16, #tpu.memory_space<vmem>>, vector<1x1x8x8xbf16>,
    %87 = vector.extract_strided_slice %28 {offsets = [0, 56], sizes = [8, 8], strides = [1, 1]} : vector<8x96xf32> to vector<8x8xf32>
    %88 = arith.truncf %87 : vector<8x8xf32> to vector<8x8xbf16>
    %c0_54 = arith.constant 0 : index
    %c3_55 = arith.constant 3 : index
    %c0_56 = arith.constant 0 : index
    %c0_57 = arith.constant 0 : index
    %89 = vector.load %arg7[%c0_54, %c3_55, %c0_56, %c0_57] : memref<1x4x8x8xbf16, #tpu.memory_space<vmem>>, vector<1x1x8x8xbf16>
    %90 = vector.shape_cast %89 : vector<1x1x8x8xbf16> to vector<8x8xbf16>
    %91 = vector.shape_cast %88 : vector<8x8xbf16> to vector<1x1x8x8xbf16>
    tpu.vector_store %arg7[%c0_54, %c3_55, %c0_56, %c0_57], %91 {strides = array<i32>} : memref<1x4x8x8xbf16, #tpu.memory_space<vmem>>, vector<1x1x8x8xbf16>,
    %92 = vector.extract_strided_slice %28 {offsets = [0, 88], sizes = [8, 8], strides = [1, 1]} : vector<8x96xf32> to vector<8x8xf32>
    %93 = arith.truncf %92 : vector<8x8xf32> to vector<8x8xbf16>
    %c0_58 = arith.constant 0 : index
    %c3_59 = arith.constant 3 : index
    %c0_60 = arith.constant 0 : index
    %c0_61 = arith.constant 0 : index
    %94 = vector.load %arg8[%c0_58, %c3_59, %c0_60, %c0_61] : memref<1x4x8x8xbf16, #tpu.memory_space<vmem>>, vector<1x1x8x8xbf16>
    %95 = vector.shape_cast %94 : vector<1x1x8x8xbf16> to vector<8x8xbf16>
    %96 = vector.shape_cast %93 : vector<8x8xbf16> to vector<1x1x8x8xbf16>
    tpu.vector_store %arg8[%c0_58, %c3_59, %c0_60, %c0_61], %96 {strides = array<i32>} : memref<1x4x8x8xbf16, #tpu.memory_space<vmem>>, vector<1x1x8x8xbf16>,
    return
  }
  func.func @transform_0(%arg0: i32, %arg1: i32) -> (i32, i32, i32) {
    %c0_i32 = arith.constant 0 : i32
    %c0_i32_0 = arith.constant 0 : i32
    return %arg0, %arg1, %c0_i32 : i32, i32, i32
  }
  func.func @transform_1(%arg0: i32, %arg1: i32) -> (i32, i32) {
    %c0_i32 = arith.constant 0 : i32
    %c0_i32_0 = arith.constant 0 : i32
    %c0_i32_1 = arith.constant 0 : i32
    return %c0_i32, %c0_i32_0 : i32, i32
  }
  func.func @transform_2(%arg0: i32, %arg1: i32) -> (i32, i32) {
    %c0_i32 = arith.constant 0 : i32
    %c0_i32_0 = arith.constant 0 : i32
    %c0_i32_1 = arith.constant 0 : i32
    return %c0_i32, %c0_i32_0 : i32, i32
  }
  func.func @transform_3(%arg0: i32, %arg1: i32) -> (i32, i32) {
    %c0_i32 = arith.constant 0 : i32
    %c0_i32_0 = arith.constant 0 : i32
    %c0_i32_1 = arith.constant 0 : i32
    return %c0_i32, %c0_i32_0 : i32, i32
  }
  func.func @transform_4(%arg0: i32, %arg1: i32) -> (i32, i32, i32, i32) {
    %c0_i32 = arith.constant 0 : i32
    %c0_i32_0 = arith.constant 0 : i32
    %c0_i32_1 = arith.constant 0 : i32
    return %arg0, %c0_i32, %arg1, %c0_i32_0 : i32, i32, i32, i32
  }
  func.func @transform_5(%arg0: i32, %arg1: i32) -> (i32, i32, i32, i32) {
    %c0_i32 = arith.constant 0 : i32
    %c0_i32_0 = arith.constant 0 : i32
    %c0_i32_1 = arith.constant 0 : i32
    return %arg0, %c0_i32, %arg1, %c0_i32_0 : i32, i32, i32, i32
  }
  func.func @transform_6(%arg0: i32, %arg1: i32) -> (i32, i32, i32, i32) {
    %c0_i32 = arith.constant 0 : i32
    %c0_i32_0 = arith.constant 0 : i32
    %c0_i32_1 = arith.constant 0 : i32
    return %arg0, %c0_i32, %arg1, %c0_i32_0 : i32, i32, i32, i32
  }
}

</mosaic_0001>

<bundles_post_ra>
// kernel: tpu_custom_call.1
= control target key start
LH: loop header
LB: loop body
LE: loop exit
PB: predicated region body
PF: predicated region fallthrough
CT: control target
= control target key end

     0   :  { %6 = vsyncpa [#allocation3], 0  ;;  %s341_s0 = inlined_call_operand.hbm [shape: f32[8,128], index: 0, kind: input, shape index: {}]   ;;  %s342_s1 = inlined_call_operand.hbm [shape: f32[8,128], index: 1, kind: output, shape index: {}]  }
   0x1   :  { %7 = vsyncpa [#allocation4], 0  ;;  %s262_s6 = smov 0  }
   0x2 LB: > { %s145_s7 = sadd.s32 4294967295, %s248_s6   ;;  %p146_p0 = scmp.ge.s32.totalorder %s248_s6, 1  ;;  %s248_s6 = sphi %s262_s6, %s13_s6  }
   0x3   : > { %p60_p1 = scmp.lt.s32.totalorder %s248_s6, 3  ;;  %p276_p3 = scmp.eq.s32.totalorder %s145_s7, 0 }
   0x4   : > { %s250_s10 = smov [#allocation2]   ;;  %s180_s15 = scalar_lea.hbm %s341_s0, 128 }
   0x5   : > { %p270_p2 = pnand %p146_p0, %p60_p1  ;;  %s73_s11 = sshll.u32 %s250_s10, 4  ;;  %s74_s11 = int_to_ptr.vmem [resolvable:$true] %s73_s11 }
   0x6   : > { %s347_s9 = scalar_select %p276_p3, 1, 0 }
   0x7   : > { %s346_s8 = scalar_select %p270_p2, 1, 0 }
   0x8   : > { %p162_p4 = pneg %p270_p2  ;;  %p181_p6 = scmp.ne.s32.totalorder %s341_s0, %s180_s15 }
   0x9   : > { %p187_p10 = scmp.lt.u32.totalorder %s180_s15, %s341_s0 }
   0xa   : > { %p284_p5 = pnand %p276_p3, %p162_p4 }
   0xc   : > { %p182_p7 = pneg %p284_p5 }
   0xe   : > { %p183_p8 = pnand %p182_p7, %p181_p6 }
  0x10   : > { %p184_p9 = pneg %p183_p8 }
  0x12   : > { %p189_p11 = pnand %p187_p10, %p184_p9 }
  0x14   : > { %192 = shalt.err (!%p189_p11)
}
  0x15   : > { %s193_s20 = scalar_lea.vmem %s74_s11, 128  ;;  %p201_p1 = scmp.lt.s32.totalorder %s74_s11, %s74_s11 }
  0x16   : > { %p194_p12 = scmp.ne.s32.totalorder %s74_s11, %s193_s20  ;;  %p202_p4 = scmp.lt.s32.totalorder %s193_s20, %s193_s20 }
  0x18   : > { %p196_p13 = pnand %p194_p12, %p182_p7  ;;  %p203_p3 = por %p202_p4, %p201_p1 }
  0x1a   : > { %p197_p0 = pneg %p196_p13 }
  0x1c   : > { %p204_p2 = pnand %p203_p3, %p197_p0 }
  0x1e   : > { %207 = shalt.err (!%p204_p2)
}
  0x1f   : > { %165 = dma.hbm_to_vmem [thread:$0]  (!%p284_p5), %s341_s0, 128, %s74_s11, [#allocation3]  }
  0x20   : > { %p349_p6 = scmp.ne.s32.totalorder %s346_s8, 0 }
  0x21   : > { %p350_p8 = scmp.ne.s32.totalorder (!%p349_p6), %s347_s9, 0 }
  0x22   : > { %86 = sbr.rel (%p349_p6) target bundleno = 67 (0x43), region = 24 }
  0x29   : > { %239 = dma.done.wait (%p350_p8), [#allocation3], 128  }
  0x2a   : > { %241 = vsyncadd (%p350_p8), [#allocation3], 4294967168  ;;  %s251_s23 = smov [#allocation5]   ;;  %v96_v0 = vld [vmem:[#allocation2] sm:$0xff]  ;;  %p312_p2 = scmp.eq.s32.totalorder %s145_s7, 1 }
  0x2b   : > { %s106_s24 = sshll.u32 %s251_s23, 4  ;;  %v97_v1 = vadd.f32 1.0, %v96_v0  ;;  %s107_s24 = int_to_ptr.vmem [resolvable:$true] %s106_s24 }
  0x2c   : > { %s208_s26 = scalar_lea.vmem %s107_s24, 128  ;;  %p215_p9 = scmp.lt.s32.totalorder %s107_s24, %s107_s24 }
  0x2d   : > { %98 = vst [vmem:[#allocation5] sm:$0xff] %v97_v1  ;;  %p209_p3 = scmp.ne.s32.totalorder %s107_s24, %s208_s26  ;;  %p216_p10 = scmp.lt.s32.totalorder %s208_s26, %s208_s26 }
  0x2f   : > { %p210_p5 = pnand %p209_p3, %p312_p2  ;;  %p217_p11 = por %p216_p10, %p215_p9 }
  0x31   : > { %p211_p7 = pneg %p210_p5 }
  0x33   : > { %p218_p12 = pnand %p217_p11, %p211_p7 }
  0x35   : > { %221 = shalt.err (!%p218_p12)
}
  0x36   : > { %s222_s29 = scalar_lea.hbm %s342_s1, 128 }
  0x37   : > { %p223_p13 = scmp.ne.s32.totalorder %s342_s1, %s222_s29  ;;  %p228_p4 = scmp.lt.u32.totalorder %s222_s29, %s342_s1 }
  0x39   : > { %p224_p0 = pnand %p223_p13, %p312_p2 }
  0x3b   : > { %p225_p1 = pneg %p224_p0 }
  0x3d   : > { %p230_p6 = pnand %p228_p4, %p225_p1 }
  0x3f   : > { %233 = shalt.err (!%p230_p6)
}
  0x40   : > { %159 = dma.vmem_to_hbm [thread:$0]  (%p312_p2), %s107_s24, 128, %s342_s1, [#allocation4]  }
  0x41   : > { %243 = dma.done.wait (%p312_p2), [#allocation4], 128  }
  0x42   : > { %245 = vsyncadd (%p312_p2), [#allocation4], 4294967168 }
  0x43 PF: > { %s13_s6 = sadd.s32 1, %s248_s6  }
  0x44   : > { %p10_p8 = scmp.ge.s32.totalorder %s13_s6, 4  }
  0x46   :  { %12 = sbr.rel (!%p10_p8) target bundleno = 2 (0x2), region = 53 }
  0x4d   :  { %119 = vsyncpa [#allocation3], 1 }
  0x4e   :  { %121 = vsyncpa [#allocation3 + $0x1], 1 }
  0x4f   :  { %122 = vsyncpa [#allocation4], 1 }
  0x50   :  { %124 = vsyncpa [#allocation4 + $0x1], 1 }

// kernel: tpu_custom_call.1
= control target key start
LH: loop header
LB: loop body
LE: loop exit
PB: predicated region body
PF: predicated region fallthrough
CT: control target
= control target key end

     0   :  { %s1452_s0 = inlined_call_operand.hbm [shape: f32[2,8,32], index: 0, kind: input, shape index: {}]   ;;  %s1453_s1 = inlined_call_operand.vmem [shape: f32[1,32], index: 1, kind: input, shape index: {}]   ;;  %s1454_s2 = inlined_call_operand.vmem [shape: f32[1,32], index: 2, kind: input, shape index: {}]   ;;  %s1455_s3 = inlined_call_operand.hbm [shape: bf16[32,96], index: 3, kind: input, shape index: {}]   ;;  %s1456_s4 = inlined_call_operand.hbm [shape: bf16[2,4,8,8], index: 4, kind: output, shape index: {0}]   ;;  %s1457_s5 = inlined_call_operand.hbm [shape: bf16[2,4,8,8], index: 5, kind: output, shape index: {1}]   ;;  %s1458_s6 = inlined_call_operand.hbm [shape: bf16[2,4,8,8], index: 6, kind: output, shape index: {2}]  }
   0x1   :  { %1465 = sst [smem:[#allocation15_spill]] %s1455_s3 }
   0x2   :  { %12 = vsyncpa [#allocation3], 0 }
   0x3   :  { %14 = vsyncpa [#allocation3 + $0x1], 0 }
   0x4   :  { %15 = vsyncpa [#allocation6], 0 }
   0x5   :  { %16 = vsyncpa [#allocation4], 0 }
   0x6   :  { %18 = vsyncpa [#allocation4 + $0x1], 0 }
   0x7   :  { %19 = vsyncpa [#allocation9], 0 }
   0x8   :  { %21 = vsyncpa [#allocation9 + $0x1], 0  ;;  %s1117_s21 = smov 0   ;;  %s1119_s22 = smov 0  }
   0x9   :  { %s1121_s23 = smov 0   ;;  %s1123_s24 = smov 0  }
   0xa   :  { %s1125_s25 = smov 0   ;;  %s1127_s26 = smov 0  }
   0xb LB: > { %s1148_s27 = sadd.s32 4294967295, %s1059_s26   ;;  %s1462_s28 = sadd.s32 4294967294, %s1059_s26   ;;  %s1059_s26 = sphi %s1127_s26, %s27_s26   ;;  %s1055_s25 = sphi %s1125_s25, %s1488_s25   ;;  %s1051_s24 = sphi %s1123_s24, %s1487_s24   ;;  %s1047_s23 = sphi %s1121_s23, %s1486_s23   ;;  %s1043_s22 = sphi %s1119_s22, %s1485_s22   ;;  %s1039_s21 = sphi %s1117_s21, %s1484_s21  }
   0xc   : > { %p61_p0 = scmp.ne.s32.totalorder %s1043_s22, %s1039_s21  ;;  %p1459_p1 = scmp.eq.s32.totalorder %s1148_s27, 0 }
   0xd   : > { %p156_p3 = scmp.eq.s32.totalorder %s1462_s28, 1  ;;  %p698_p5 = scmp.ge.s32.totalorder %s1059_s26, 1 }
   0xe   : > { %p1159_p4 = por %p1459_p1, %p61_p0  ;;  %p219_p7 = scmp.lt.s32.totalorder %s1059_s26, 3 }
   0xf   : > { %p1164_p6 = por %p156_p3, %p61_p0  ;;  %s1061_s8 = smov [#allocation5]  }
  0x10   : > { %s1466_s29 = scalar_select %p1159_p4, 1, 0 }
  0x11   : > { %s1467_s30 = scalar_select %p1164_p6, 1, 0 }
  0x12   : > { %p1169_p8 = pnand %p698_p5, %p219_p7  ;;  %s237_s9 = sshll.u32 %s1061_s8, 4  ;;  %s238_s9 = int_to_ptr.vmem [resolvable:$true] %s237_s9 }
  0x13   : > { %s39_s11 = sadd.s32 1, %s1055_s25  ;;  %s1470_s3 = sld [smem:[#allocation15_spill]] }
  0x14   : > { %s1468_s7 = scalar_select %p1169_p8, 1, 0 }
  0x15   : > { %p764_p9 = pneg %p1169_p8 }
  0x17   : > { %p1178_p11 = pnand %p764_p9, %p1459_p1 }
  0x19   : > { %s855_s14 = scalar_lea.hbm %s1470_s3, 256  ;;  %p857_p13 = pneg %p1178_p11 }
  0x1a   : > { %p856_p12 = scmp.ne.s32.totalorder %s1470_s3, %s855_s14  ;;  %p862_p5 = scmp.lt.u32.totalorder %s855_s14, %s1470_s3 }
  0x1c   : > { %p858_p0 = pnand %p857_p13, %p856_p12 }
  0x1e   : > { %p859_p3 = pneg %p858_p0 }
  0x20   : > { %p864_p7 = pnand %p862_p5, %p859_p3 }
  0x22   : > { %867 = shalt.err (!%p864_p7)
}
  0x23   : > { %s868_s19 = scalar_lea.vmem %s238_s9, 256  ;;  %p876_p2 = scmp.lt.s32.totalorder %s238_s9, %s238_s9 }
  0x24   : > { %p869_p9 = scmp.ne.s32.totalorder %s238_s9, %s868_s19  ;;  %p877_p6 = scmp.lt.s32.totalorder %s868_s19, %s868_s19 }
  0x26   : > { %p871_p10 = pnand %p869_p9, %p857_p13  ;;  %p878_p4 = por %p877_p6, %p876_p2 }
  0x28   : > { %p872_p1 = pneg %p871_p10 }
  0x2a   : > { %p879_p8 = pnand %p878_p4, %p872_p1 }
  0x2c   : > { %882 = shalt.err (!%p879_p8)
}
  0x2d   : > { %s1062_s20 = smov 64   ;;  %s1063_s8 = smov 4  }
  0x2e   : > { %767 = dma.hbm_to_vmem [thread:$0]  (!%p1178_p11), %s1470_s3, 256, %s238_s9, [#allocation6], %s1062_s20, %s1062_s20, %s1063_s8  }
  0x2f   : > { %p41_p1 = scmp.ge.s32.totalorder %s39_s11, 2  ;;  %s48_s14 = sadd.s32 1, %s1047_s23 }
  0x30   : > { %p55_p2 = scmp.ne.s32.totalorder %s1047_s23, %s1043_s22  ;;  %p56_p4 = scmp.eq.s32.totalorder %s1059_s26, 0 }
  0x31   : > { %s1490_s11 = smov (%p41_p1, %s39_s11), 0  ;;  %p1472_p8 = scmp.eq.s32.totalorder %s1148_s27, 1 }
  0x32   : > { %p1205_p6 = por %p56_p4, %p55_p2  ;;  %s43_s10 = ssub.s32 %s1055_s25, %s1490_s11 }
  0x33   : > { %p1211_p10 = por %p1472_p8, %p55_p2  ;;  %p783_p12 = scmp.lt.s32.totalorder %s1059_s26, 2 }
  0x34   : > { %p46_p11 = scmp.eq.s32.totalorder %s43_s10, 0  ;;  %s251_s9 = sand.u32 1, %s1047_s23  }
  0x35   : > { %s701_s17 = sshll.u32 %s251_s9, 3  ;;  %s702_s19 = sshll.u32 %s1055_s25, 7 }
  0x36   : > { %s1220_s18 = scalar_select %p46_p11, %s1047_s23, %s48_s14  }
  0x37   : > { %s1226_s12 = scalar_lea.hbm %s1452_s0, %s702_s19  ;;  %s255_s13 = scalar_lea.vmem [#allocation2], %s701_s17 }
  0x38   : > { %s263_s28 = sshll.u32 %s255_s13, 4  ;;  %p1232_p13 = pnand %p783_p12, %p1205_p6  ;;  %s1228_s28 = int_to_ptr.vmem [resolvable:$true] %s263_s28 }
  0x39   : > { %s252_s14 = scalar_lea.sflag [#allocation3], %s251_s9  ;;  %s883_s3 = scalar_lea.hbm %s1226_s12, 128 }
  0x3a   : > { %p884_p0 = scmp.ne.s32.totalorder %s1226_s12, %s883_s3  ;;  %p885_p3 = pneg %p1232_p13 }
  0x3b   : > { %s888_s20 = scalar_lea.hbm %s1452_s0, 256  ;;  %p889_p9 = scmp.lt.u32.totalorder %s1226_s12, %s1452_s0 }
  0x3c   : > { %p886_p5 = pnand %p885_p3, %p884_p0  ;;  %p890_p1 = scmp.lt.u32.totalorder %s888_s20, %s883_s3 }
  0x3d   : > { %p892_p4 = scmp.lt.u32.totalorder %s883_s3, %s1226_s12 }
  0x3e   : > { %p887_p7 = pneg %p886_p5  ;;  %p891_p2 = por %p890_p1, %p889_p9 }
  0x40   : > { %p893_p6 = por %p892_p4, %p891_p2 }
  0x42   : > { %p894_p8 = pnand %p893_p6, %p887_p7 }
  0x44   : > { %897 = shalt.err (!%p894_p8)
}
  0x45   : > { %s898_s9 = scalar_lea.vmem %s1228_s28, 128  ;;  %s1064_s13 = smov [#allocation2]  }
  0x46   : > { %p899_p12 = scmp.ne.s32.totalorder %s1228_s28, %s898_s9  ;;  %s903_s17 = sshll.u32 %s1064_s13, 4  ;;  %s904_s17 = int_to_ptr.vmem [resolvable:$false] %s903_s17 }
  0x47   : > { %s905_s19 = scalar_lea.vmem %s904_s17, 256  ;;  %p906_p5 = scmp.lt.s32.totalorder %s1228_s28, %s904_s17 }
  0x48   : > { %p901_p11 = pnand %p899_p12, %p885_p3  ;;  %p907_p9 = scmp.lt.s32.totalorder %s905_s19, %s898_s9 }
  0x4a   : > { %p902_p0 = pneg %p901_p11  ;;  %p908_p1 = por %p907_p9, %p906_p5 }
  0x4c   : > { %p909_p2 = pnand %p908_p1, %p902_p0 }
  0x4e   : > { %912 = shalt.err (!%p909_p2)
}
  0x4f   : > { %771 = dma.hbm_to_vmem [thread:$0]  (!%p1232_p13), %s1226_s12, 128, %s1228_s28, %s252_s14  }
  0x50   : > { %p1475_p7 = scmp.ne.s32.totalorder %s1468_s7, 0 }
  0x51   : > { %s1264_s3 = sand.u32 (!%p1475_p7), 1, %s1043_s22   ;;  %p1476_p3 = scmp.ne.s32.totalorder (!%p1475_p7), %s1466_s29, 0 }
  0x52   : > { %272 = sbr.rel (%p1475_p7) target bundleno = 814 (0x32e), region = 36  ;;  %s704_s20 = sshll.u32 (!%p1475_p7), %s1264_s3, 3 }
  0x53   : > { %s275_s15 = scalar_lea.sflag (!%p1475_p7), [#allocation3], %s1264_s3  ;;  %s278_s8 = scalar_lea.vmem (!%p1475_p7), [#allocation2], %s704_s20 }
  0x59   : > { %1022 = dma.done.wait (%p1476_p3), %s275_s15, 128  }
  0x5a   : > { %1024 = vsyncadd (%p1476_p3), %s275_s15, 4294967168  ;;  %p1477_p4 = scmp.eq.s32.totalorder %s1148_s27, 0 }
  0x5c   : > { %1026 = dma.done.wait (%p1477_p4), [#allocation6], 256   ;;  %p1478_p13 = pmov %p1477_p4 }
  0x5d   : > { %vm325_vm0 = vcmask 261120   ;;  %v322_v0 = vld [vmem:[%s278_s8] sm:$0xff]  ;;  %v851_v7 = vld [vmem:[#allocation5] sm:$0xff]   ;;  %v1065_v8 = vmov 0.0   ;;  %vm1066_vm1 = vmmov 0   ;;  %v852_v9 = vld [vmem:[#allocation5 + $0x8] sm:$0xff]  }
  0x5e   : > { %1028 = vsyncadd (%p1478_p13), [#allocation6], 4294967040  ;;  %v326_v1 = vsel %vm325_vm0, %v322_v0, 0.0  ;;  %744 = vmatprep.subr.bf16.mxu0 %v1065_v8  ;;  %748 = vmatprep.mubr.msk.bf16.mxu0 %vm1066_vm1, %v1065_v8  ;;  %v709_v14 = vld [vmem:[%s1453_s1] ss:$0 sm:$0xff]  ;;  %s1286_s10 = sshll.u32 %s1264_s3, 4 }
  0x5f   : > { %327 = vadd.xlane.f32.xlu0 %v326_v1  ;;  %745 = vmatpush3.bf16.msra.mxu0 %v851_v7  ;;  %v710_v16 = vld [vmem:[%s1454_s2] ss:$0 sm:$0xff]  ;;  %vm416_vm2 = vcmask 60416   ;;  %s1067_s14 = smov 80   ;;  %s1068_s9 = smov 96  }
  0x60   : > { %746 = vmatprep.subr.bf16.mxu0 %v1065_v8  ;;  %s1289_s13 = scalar_lea.vmem [#allocation7], %s1286_s10  ;;  %s1069_s17 = smov 88  }
  0x61   : > { %s1070_s19 = smov 104   ;;  %s1071_s20 = smov 72  }
  0x62   : > { %s1463_s15 = smov 64   ;;  %s1073_s8 = smov 56  }
  0x63   : > { %747 = vmatpush3.bf16.msra.mxu0 %v852_v9  ;;  %s1074_s28 = smov 48   ;;  %s1075_s29 = smov 120  }
  0x64   : > { %s1076_s7 = smov 112   ;;  %s1077_s12 = smov 40  }
  0xec   : > { %v328_v2 = vpop.xlane.xlu0 %327 }
  0xed   : > { %v330_v3 = vmul.f32 0.03125, %v328_v2 }
  0xef   : > { %v331_v4 = vsub.f32 %v322_v0, %v330_v3 }
  0xf1   : > { %v332_v5 = vmul.f32 %v331_v4, %v331_v4 }
  0xf3   : > { %v333_v6 = vsel %vm325_vm0, %v332_v5, 0.0 }
  0xf4   : > { %334 = vadd.xlane.f32.xlu0 %v333_v6 }
 0x181   : > { %v335_v10 = vpop.xlane.xlu0 %334 }
 0x182   : > { %v336_v11 = vmul.f32 0.03125, %v335_v10 }
 0x184   : > { %v337_v12 = vadd.f32 1e-05, %v336_v11 }
 0x186   : > { %853 = vrsqrt.f32 %v337_v12 }
 0x190   : > { %v854_v13 = vpop.eup %853 }
 0x191   : > { %v339_v15 = vmul.f32 %v854_v13, %v331_v4 }
 0x193   : > { %v346_v17 = vmul.f32 %v709_v14, %v339_v15 }
 0x195   : > { %v353_v18 = vadd.f32 %v710_v16, %v346_v17 }
 0x197   : > { %v354_v19 = vpack.c.bf16 %v353_v18, %v353_v18 }
 0x199   : > { %749 = vmatmul.mubr.msk.bf16.vlgmr.msra.gmra.mrb[0].mxu0 %vm325_vm0, %v354_v19 }
 0x26c   : > { %v408_v20 = vpop.f32.mrb[0].mxu0 }
 0x26d   : > { %v414_v21 = vmul.f32 0.35355338, %v408_v20  ;;  %v736_v22 = vpack.c.bf16 %v408_v20, %v408_v20  ;;  %v750_v23 = vpop.f32.mrb[1].mxu0 }
 0x26e   : > { %v411_v24 = vpop.f32.mrb[2].mxu0 }
 0x26f   : > { %v415_v25 = vpack.c.bf16 %v414_v21, %v414_v21  ;;  %453 = vrot.lane.b32.xlu0 %v736_v22, %s1067_s14  ;;  %422 = vrot.lane.b32.xlu1 %v736_v22, %s1068_s9  ;;  %v751_v26 = vpop.f32.mrb[3].mxu0  ;;  %s313_s14 = scalar_lea.vmem [#allocation8], %s1286_s10 }
 0x270   : > { %s520_s9 = sshll.u32 %s313_s14, 4  ;;  %s1304_s9 = int_to_ptr.vmem [resolvable:$true] %s520_s9 }
 0x271   : > { %417 = vst.msk [vmem:[%s1289_s13] sm:$0xf] %vm416_vm2, %v415_v25 }
 0x273   : > { %438 = vrot.lane.b32.xlu1 %v736_v22, %s1069_s17  ;;  %463 = vrot.lane.b32.xlu0 %v415_v25, %s1070_s19  ;;  %s483_s17 = sand.u32 1, %s1148_s27   ;;  %s1299_s19 = sshll.u32 %s1051_s24, 8 }
 0x274   : > { %s1313_s24 = scalar_lea.sflag [#allocation9], %s483_s17  ;;  %s913_s27 = scalar_lea.vmem %s1304_s9, 256 }
 0x275   : > { %p914_p6 = scmp.ne.s32.totalorder %s1304_s9, %s913_s27 }
 0x277   : > { %468 = vrot.lane.b32.xlu1 %v736_v22, %s1071_s20  ;;  %p915_p8 = pnand %p914_p6, %p1211_p10 }
 0x279   : > { %p916_p12 = pneg %p915_p8 }
 0x27b   : > { %426 = vrot.lane.b32.xlu1 %v736_v22, %s1463_s15 }
 0x27f   : > { %443 = vrot.lane.b32.xlu1 %v736_v22, %s1073_s8 }
 0x283   : > { %458 = vrot.lane.b32.xlu1 %v736_v22, %s1074_s28  ;;  %s1310_s28 = scalar_lea.hbm %s1457_s5, %s1299_s19 }
 0x287   : > { %433 = vrot.lane.b32.xlu1 %v415_v25, %s1075_s29  ;;  %s1078_s29 = smov [#allocation8]  }
 0x28b   : > { %448 = vrot.lane.b32.xlu1 %v415_v25, %s1076_s7  ;;  %s917_s7 = sshll.u32 %s1078_s29, 4  ;;  %s918_s7 = int_to_ptr.vmem [resolvable:$false] %s917_s7 }
 0x28c   : > { %p920_p11 = scmp.lt.s32.totalorder %s1304_s9, %s918_s7 }
 0x28f   : > { %473 = vrot.lane.b32.xlu1 %v736_v22, %s1077_s12  ;;  %s919_s12 = scalar_lea.vmem %s918_s7, 512 }
 0x290   : > { %p921_p0 = scmp.lt.s32.totalorder %s919_s12, %s913_s27 }
 0x292   : > { %p922_p5 = por %p921_p0, %p920_p11 }
 0x294   : > { %p923_p9 = pnand %p922_p5, %p916_p12 }
 0x2e1   : > { %v454_v27 = vpop.permute.xlu0 %453  ;;  %v423_v28 = vpop.permute.xlu1 %422 }
 0x2e2   : > { %720 = vst.msk [vmem:[%s313_s14 + $0x8] sm:$0xf] %vm416_vm2, %v454_v27  ;;  %425 = vst.msk [vmem:[%s313_s14] sm:$0xf] %vm416_vm2, %v423_v28 }
 0x2e5   : > { %v439_v29 = vpop.permute.xlu1 %438  ;;  %v464_v30 = vpop.permute.xlu0 %463 }
 0x2e6   : > { %717 = vst.msk [vmem:[%s313_s14 + $0x4] sm:$0xf] %vm416_vm2, %v439_v29  ;;  %722 = vst.msk [vmem:[%s1289_s13 + $0xc] sm:$0xf] %vm416_vm2, %v464_v30 }
 0x2e9   : > { %v469_v31 = vpop.permute.xlu1 %468 }
 0x2ea   : > { %723 = vst.msk [vmem:[%s313_s14 + $0xc] sm:$0xf] %vm416_vm2, %v469_v31 }
 0x2eb   : > { %926 = shalt.err (!%p923_p9)
}
 0x2ec   : > { %s927_s14 = scalar_lea.hbm %s1310_s28, 256  ;;  %s931_s8 = scalar_lea.hbm %s1457_s5, 512 }
 0x2ed   : > { %p928_p1 = scmp.ne.s32.totalorder %s1310_s28, %s927_s14  ;;  %p932_p3 = scmp.lt.u32.totalorder %s1310_s28, %s1457_s5 }
 0x2ee   : > { %p933_p4 = scmp.lt.u32.totalorder %s931_s8, %s927_s14  ;;  %p935_p6 = scmp.lt.u32.totalorder %s927_s14, %s1310_s28 }
 0x2ef   : > { %p929_p2 = pnand %p928_p1, %p1211_p10 }
 0x2f0   : > { %p934_p13 = por %p933_p4, %p932_p3 }
 0x2f1   : > { %p930_p7 = pneg %p929_p2 }
 0x2f2   : > { %p936_p8 = por %p935_p6, %p934_p13 }
 0x2f4   : > { %p937_p12 = pnand %p936_p8, %p930_p7 }
 0x2f6   : > { %940 = shalt.err (!%p937_p12)
}
 0x2f7   : > { %s1079_s27 = smov 4   ;;  %v427_v32 = vpop.permute.xlu1 %426  ;;  %s1341_s12 = scalar_lea.vmem [#allocation10], %s1286_s10 }
 0x2f8   : > { %759 = dma.vmem_to_hbm [thread:$0]  (%p1211_p10), %s1304_s9, 256, %s1310_s28, %s1313_s24, %s1463_s15, %s1463_s15, %s1079_s27  }
 0x2f9   : > { %429 = vst.msk [vmem:[%s1341_s12] sm:$0xf] %vm416_vm2, %v427_v32  ;;  %s503_s14 = sshll.u32 %s1289_s13, 4  ;;  %s1358_s28 = scalar_lea.hbm %s1456_s4, %s1299_s19  ;;  %s1352_s14 = int_to_ptr.vmem [resolvable:$true] %s503_s14 }
 0x2fa   : > { %s479_s20 = scalar_lea.sflag [#allocation4], %s1264_s3  ;;  %s941_s8 = scalar_lea.vmem %s1352_s14, 256 }
 0x2fb   : > { %v444_v33 = vpop.permute.xlu1 %443  ;;  %p942_p11 = scmp.ne.s32.totalorder %s1352_s14, %s941_s8  ;;  %s1080_s29 = smov [#allocation7]  }
 0x2fc   : > { %718 = vst.msk [vmem:[%s1341_s12 + $0x4] sm:$0xf] %vm416_vm2, %v444_v33  ;;  %s945_s7 = sshll.u32 %s1080_s29, 4  ;;  %s946_s7 = int_to_ptr.vmem [resolvable:$false] %s945_s7 }
 0x2fd   : > { %p943_p0 = pnand %p942_p11, %p1211_p10  ;;  %s947_s15 = scalar_lea.vmem %s946_s7, 512 }
 0x2fe   : > { %p948_p9 = scmp.lt.s32.totalorder %s1352_s14, %s946_s7  ;;  %p949_p1 = scmp.lt.s32.totalorder %s947_s15, %s941_s8 }
 0x2ff   : > { %v459_v34 = vpop.permute.xlu1 %458  ;;  %p944_p5 = pneg %p943_p0 }
 0x300   : > { %721 = vst.msk [vmem:[%s1341_s12 + $0x8] sm:$0xf] %vm416_vm2, %v459_v34  ;;  %p950_p2 = por %p949_p1, %p948_p9 }
 0x302   : > { %p951_p7 = pnand %p950_p2, %p944_p5 }
 0x303   : > { %v434_v35 = vpop.permute.xlu1 %433 }
 0x304   : > { %716 = vst.msk [vmem:[%s1289_s13 + $0x4] sm:$0xf] %vm416_vm2, %v434_v35 }
 0x307   : > { %v449_v36 = vpop.permute.xlu1 %448 }
 0x308   : > { %719 = vst.msk [vmem:[%s1289_s13 + $0x8] sm:$0xf] %vm416_vm2, %v449_v36 }
 0x309   : > { %954 = shalt.err (!%p951_p7)
}
 0x30a   : > { %s955_s13 = scalar_lea.hbm %s1358_s28, 256  ;;  %s959_s29 = scalar_lea.hbm %s1456_s4, 512 }
 0x30b   : > { %p956_p3 = scmp.ne.s32.totalorder %s1358_s28, %s955_s13  ;;  %p960_p6 = scmp.lt.u32.totalorder %s1358_s28, %s1456_s4 }
 0x30c   : > { %p961_p8 = scmp.lt.u32.totalorder %s959_s29, %s955_s13  ;;  %p963_p11 = scmp.lt.u32.totalorder %s955_s13, %s1358_s28 }
 0x30d   : > { %p957_p4 = pnand %p956_p3, %p1211_p10 }
 0x30e   : > { %p962_p12 = por %p961_p8, %p960_p6 }
 0x30f   : > { %p958_p13 = pneg %p957_p4 }
 0x310   : > { %p964_p0 = por %p963_p11, %p962_p12 }
 0x312   : > { %p965_p5 = pnand %p964_p0, %p958_p13 }
 0x314   : > { %968 = shalt.err (!%p965_p5)
}
 0x315   : > { %s1479_s15 = smov 64   ;;  %s1480_s17 = sshll.u32 %s1341_s12, 4  ;;  %v474_v37 = vpop.permute.xlu1 %473  ;;  %s1392_s17 = int_to_ptr.vmem [resolvable:$true] %s1480_s17 }
 0x316   : > { %758 = dma.vmem_to_hbm [thread:$0]  (%p1211_p10), %s1352_s14, 256, %s1358_s28, %s479_s20, %s1479_s15, %s1479_s15, %s1079_s27  }
 0x317   : > { %s1398_s10 = scalar_lea.hbm %s1458_s6, %s1299_s19  ;;  %724 = vst.msk [vmem:[%s1341_s12 + $0xc] sm:$0xf] %vm416_vm2, %v474_v37  ;;  %s969_s3 = scalar_lea.vmem %s1392_s17, 256 }
 0x318   : > { %p970_p9 = scmp.ne.s32.totalorder %s1392_s17, %s969_s3  ;;  %s1081_s14 = smov [#allocation10]  }
 0x319   : > { %s973_s28 = sshll.u32 %s1081_s14, 4  ;;  %s974_s28 = int_to_ptr.vmem [resolvable:$false] %s973_s28 }
 0x31a   : > { %p971_p1 = pnand %p970_p9, %p1211_p10  ;;  %s975_s20 = scalar_lea.vmem %s974_s28, 512 }
 0x31b   : > { %p976_p7 = scmp.lt.s32.totalorder %s1392_s17, %s974_s28  ;;  %p977_p3 = scmp.lt.s32.totalorder %s975_s20, %s969_s3 }
 0x31c   : > { %p972_p2 = pneg %p971_p1 }
 0x31d   : > { %p978_p4 = por %p977_p3, %p976_p7 }
 0x31f   : > { %p979_p13 = pnand %p978_p4, %p972_p2 }
 0x321   : > { %982 = shalt.err (!%p979_p13)
}
 0x322   : > { %s983_s19 = scalar_lea.hbm %s1398_s10, 256  ;;  %s987_s29 = scalar_lea.hbm %s1458_s6, 512 }
 0x323   : > { %p984_p6 = scmp.ne.s32.totalorder %s1398_s10, %s983_s19  ;;  %p988_p11 = scmp.lt.u32.totalorder %s1398_s10, %s1458_s6 }
 0x324   : > { %p989_p0 = scmp.lt.u32.totalorder %s987_s29, %s983_s19  ;;  %p991_p9 = scmp.lt.u32.totalorder %s983_s19, %s1398_s10 }
 0x325   : > { %p985_p8 = pnand %p984_p6, %p1211_p10 }
 0x326   : > { %p990_p5 = por %p989_p0, %p988_p11 }
 0x327   : > { %p986_p12 = pneg %p985_p8 }
 0x328   : > { %p992_p1 = por %p991_p9, %p990_p5 }
 0x32a   : > { %p993_p2 = pnand %p992_p1, %p986_p12 }
 0x32c   : > { %996 = shalt.err (!%p993_p2)
}
 0x32d   : > { %760 = dma.vmem_to_hbm [thread:$0]  (%p1211_p10), %s1392_s17, 256, %s1398_s10, %s1313_s24, %s1479_s15, %s1479_s15, %s1079_s27  }
 0x32e PF: > { %s552_s13 = sand.u32 1, %s1039_s21   ;;  %p1481_p7 = scmp.ne.s32.totalorder %s1467_s30, 0 }
 0x32f   : > { %p1482_p3 = scmp.ge.s32.totalorder %s1059_s26, 2  ;;  %s553_s3 = scalar_lea.sflag [#allocation4], %s552_s13 }
 0x331   : > { %p773_p4 = pnand %p1482_p3, %p1481_p7 }
 0x333   : > { %1030 = dma.done.wait (!%p773_p4), %s553_s3, 256  }
 0x334   : > { %1032 = vsyncadd (!%p773_p4), %s553_s3, 4294967040  ;;  %s1483_s16 = sadd.s32 4294967294, %s1059_s26  }
 0x335   : > { %s561_s14 = sand.u32 1, %s1483_s16  }
 0x336   : > { %s562_s28 = scalar_lea.sflag [#allocation9], %s561_s14 }
 0x337   : > { %1034 = dma.done.wait (!%p773_p4), %s562_s28, 512  }
 0x338   : > { %1036 = vsyncadd (!%p773_p4), %s562_s28, 4294966784  ;;  %s27_s26 = sadd.s32 1, %s1059_s26   ;;  %s1484_s21 = smov %s1043_s22 }
 0x339   : > { %p24_p10 = scmp.ge.s32.totalorder %s27_s26, 4   ;;  %s1485_s22 = smov %s1047_s23 }
 0x33a   : > { %s1486_s23 = smov %s1220_s18  ;;  %s1487_s24 = smov %s1055_s25 }
 0x33b   : > { %s1488_s25 = smov %s1490_s11  ;;  %26 = sbr.rel (!%p24_p10) target bundleno = 11 (0xb), region = 126 }
 0x342   :  { %576 = vsyncpa [#allocation3], 1 }
 0x343   :  { %578 = vsyncpa [#allocation3 + $0x1], 1 }
 0x344   :  { %579 = vsyncpa [#allocation6], 1 }
 0x345   :  { %580 = vsyncpa [#allocation4], 1 }
 0x346   :  { %582 = vsyncpa [#allocation4 + $0x1], 1 }
 0x347   :  { %583 = vsyncpa [#allocation9], 1 }
 0x348   :  { %585 = vsyncpa [#allocation9 + $0x1], 1 }

</bundles_post_ra>
